<compile_context>
chip_gen: v7x
topology: tpu7x:2x2x1
jax: 0.10.0
libtpu: 0.0.40
codegen_flags: <defaults>
</compile_context>

<pallas_src>
import functools

import jax
import jax.numpy as jnp
from jax.experimental import pallas as pl
from jax.experimental.pallas import tpu as pltpu


def _avgpool_kernel(x_ref, o_ref, *, kernel_size, stride, out_dim):
    """Average pooling over the sublane (sequence) axis.

    x_ref: (Lp, TM) block  -- padded sequence on sublanes, rows (N*C) on lanes.
    o_ref: (out_dim, TM) block.

    out[j, :] = mean_t x[j*stride + t, :]  implemented as kernel_size
    sublane-strided loads accumulated in f32 on the VPU.
    """

    def tap(t):
        if stride == 1:
            sl = pl.ds(t, out_dim)
        else:
            sl = pl.ds(t, out_dim, stride)
        return x_ref[sl, :].astype(jnp.float32)

    acc = tap(0)
    for t in range(1, kernel_size):
        acc = acc + tap(t)
    o_ref[...] = (acc * (1.0 / kernel_size)).astype(o_ref.dtype)


def my_avg_pool1d_pad_same(x, kernel_size: int, stride: int):
    """AvgPool1d with SAME reflect padding. x: (N, C, L) -> (N, C, out_dim)."""
    N, C, L = x.shape
    out_dim = -(-L // stride)
    p = max(0, (out_dim - 1) * stride + kernel_size - L)
    pad_left = p // 2
    pad_right = p - pad_left
    if max(pad_left, pad_right) >= L:
        # Matches PyTorch: F.pad(..., 'reflect') also rejects pad >= length.
        raise ValueError("reflect padding requires pad < input length")

    # Plain-JAX glue: reflect pad + flatten (N, C) -> M + transpose so the row
    # axis lands on lanes (lane-dense loads/stores) and the sequence on sublanes.
    x_pad = jnp.pad(x, ((0, 0), (0, 0), (pad_left, pad_right)), mode="reflect")
    Lp = L + p
    M = N * C
    xt = x_pad.reshape(M, Lp).T  # (Lp, M)

    M_pad = ((M + 127) // 128) * 128
    if M_pad != M:
        xt = jnp.pad(xt, ((0, 0), (0, M_pad - M)))

    # Lane-axis tile size, budgeted so double-buffered in/out blocks (plus f32
    # accumulation headroom) stay well under the scoped VMEM limit on every
    # generation (v5e/v6e 128 MiB, v7x 64 MiB physical; we ask for 32 MiB).
    isz = jnp.dtype(x.dtype).itemsize
    per_lane_col_bytes = 2 * Lp * isz + 2 * out_dim * isz + 4 * out_dim * 4
    budget_bytes = 16 * 1024 * 1024
    tm = (budget_bytes // max(per_lane_col_bytes, 1)) // 128 * 128
    tm = max(128, min(1024, tm))
    tm = min(tm, M_pad)
    grid_m = pl.cdiv(M_pad, tm)
    # TODO(synk): for extremely long sequences (Lp so large that even a 128-lane
    # block exceeds VMEM) a second, sequence-tiled (banded) variant is needed.

    kern = functools.partial(
        _avgpool_kernel, kernel_size=kernel_size, stride=stride, out_dim=out_dim
    )

    out_t = pl.pallas_call(
        kern,
        out_shape=jax.ShapeDtypeStruct((out_dim, M_pad), x.dtype),
        grid=(grid_m,),
        in_specs=[pl.BlockSpec((Lp, tm), lambda i: (0, i))],
        out_specs=pl.BlockSpec((out_dim, tm), lambda i: (0, i)),
        compiler_params=pltpu.CompilerParams(
            dimension_semantics=("parallel",),
            vmem_limit_bytes=32 * 1024 * 1024,
        ),
    )(xt)

    # Undo the layout glue: (out_dim, M_pad) -> (N, C, out_dim).
    return out_t[:, :M].T.reshape(N, C, out_dim)


def _reference_avg_pool1d_pad_same(x, kernel_size: int, stride: int):
    """Pure-JAX reference mirroring the PyTorch forward exactly."""
    N, C, L = x.shape
    out_dim = (L + stride - 1) // stride
    p = max(0, (out_dim - 1) * stride + kernel_size - L)
    pad_left = p // 2
    pad_right = p - pad_left
    x_pad = jnp.pad(x, ((0, 0), (0, 0), (pad_left, pad_right)), mode="reflect")
    windows = [
        x_pad[:, :, j * stride : j * stride + kernel_size].mean(axis=-1)
        for j in range(out_dim)
    ]
    return jnp.stack(windows, axis=-1)


if __name__ == "__main__":
    key = jax.random.PRNGKey(0)

    # Small config matching the module's typical use.
    N, C, L = 2, 4, 16
    kernel_size, stride = 3, 2
    x = jax.random.normal(key, (N, C, L), dtype=jnp.float32)

    out = my_avg_pool1d_pad_same(x, kernel_size, stride)
    out = jax.block_until_ready(out)
    ref = _reference_avg_pool1d_pad_same(x, kernel_size, stride)
    assert out.shape == ref.shape, (out.shape, ref.shape)
    assert jnp.allclose(out, ref, atol=1e-5, rtol=1e-5), "mismatch vs reference (small)"

    # Slightly larger config to exercise multi-tile grid + partial last block.
    key2 = jax.random.PRNGKey(0)
    N2, C2, L2 = 8, 160, 256
    k2, s2 = 3, 2
    x2 = jax.random.normal(key2, (N2, C2, L2), dtype=jnp.float32)
    out2 = jax.block_until_ready(my_avg_pool1d_pad_same(x2, k2, s2))
    ref2 = _reference_avg_pool1d_pad_same(x2, k2, s2)
    assert out2.shape == ref2.shape, (out2.shape, ref2.shape)
    assert jnp.allclose(out2, ref2, atol=1e-5, rtol=1e-5), "mismatch vs reference (tiled)"

    print("KERNEL_OK")
</pallas_src>

<mosaic_0001>
module attributes {stable_mosaic.version = 11 : i64} {
  func.func @_avgpool_kernel(%arg0: i32, %arg1: memref<17x128xf32, #tpu.memory_space<vmem>>, %arg2: memref<8x128xf32, #tpu.memory_space<vmem>>) attributes {dimension_semantics = [#tpu.dimension_semantics<parallel>], iteration_bounds = array<i64: 1>, scalar_prefetch = 0 : i64, scratch_operands = 0 : i64, tpu.core_type = #tpu.core_type<tc>, window_params = [{transform_indices = @transform_0, window_bounds = array<i64: 17, 128>}, {transform_indices = @transform_1, window_bounds = array<i64: 8, 128>}]} {
    %c0 = arith.constant 0 : index
    %c0_0 = arith.constant 0 : index
    %0 = tpu.strided_load %arg1[%c0, %c0_0] {strides = array<i32: 2, 1>} : memref<17x128xf32, #tpu.memory_space<vmem>>, vector<8x128xf32>
    %c1 = arith.constant 1 : index
    %c0_1 = arith.constant 0 : index
    %1 = tpu.strided_load %arg1[%c1, %c0_1] {strides = array<i32: 2, 1>} : memref<17x128xf32, #tpu.memory_space<vmem>>, vector<8x128xf32>
    %2 = arith.addf %0, %1 : vector<8x128xf32>
    %c2 = arith.constant 2 : index
    %c0_2 = arith.constant 0 : index
    %3 = tpu.strided_load %arg1[%c2, %c0_2] {strides = array<i32: 2, 1>} : memref<17x128xf32, #tpu.memory_space<vmem>>, vector<8x128xf32>
    %4 = arith.addf %2, %3 : vector<8x128xf32>
    %cst = arith.constant 0.333333343 : f32
    %5 = vector.broadcast %cst : f32 to vector<8x128xf32>
    %6 = arith.mulf %4, %5 : vector<8x128xf32>
    %c0_3 = arith.constant 0 : index
    %c0_4 = arith.constant 0 : index
    %7 = vector.load %arg2[%c0_3, %c0_4] : memref<8x128xf32, #tpu.memory_space<vmem>>, vector<8x128xf32>
    tpu.vector_store %arg2[%c0_3, %c0_4], %6 {strides = array<i32>} : memref<8x128xf32, #tpu.memory_space<vmem>>, vector<8x128xf32>,
    return
  }
  func.func @transform_0(%arg0: i32) -> (i32, i32) {
    %c0_i32 = arith.constant 0 : i32
    %c0_i32_0 = arith.constant 0 : i32
    return %c0_i32, %arg0 : i32, i32
  }
  func.func @transform_1(%arg0: i32) -> (i32, i32) {
    %c0_i32 = arith.constant 0 : i32
    %c0_i32_0 = arith.constant 0 : i32
    return %c0_i32, %arg0 : i32, i32
  }
}

</mosaic_0001>

<bundles_post_ra>
// kernel: tpu_custom_call.1
= control target key start
LH: loop header
LB: loop body
LE: loop exit
PB: predicated region body
PF: predicated region fallthrough
CT: control target
= control target key end

     0   :  { %6 = vsyncpa [#allocation3], 0  ;;  %s137_s0 = inlined_call_operand.hbm [shape: f32[17,128], index: 0, kind: input, shape index: {}]   ;;  %s138_s1 = inlined_call_operand.hbm [shape: f32[8,128], index: 1, kind: output, shape index: {}]  }
   0x1   :  { %7 = vsyncpa [#allocation4], 0  ;;  %s99_s6 = smov [#allocation2]   ;;  %s51_s10 = scalar_lea.hbm %s137_s0, 384 }
   0x2   :  { %s13_s7 = sshll.u32 %s99_s6, 4  ;;  %p52_p0 = scmp.ne.s32.totalorder %s137_s0, %s51_s10  ;;  %s14_s7 = int_to_ptr.vmem [resolvable:$true] %s13_s7 }
   0x3   :  { %p55_p1 = scmp.lt.u32.totalorder %s51_s10, %s137_s0 }
   0x5   :  { %p57_p2 = pnand %p55_p1, %p52_p0 }
   0x7   :  { %60 = shalt.err (!%p57_p2)
}
   0x8   :  { %s61_s15 = scalar_lea.vmem %s14_s7, 384  ;;  %p66_p4 = scmp.lt.s32.totalorder %s14_s7, %s14_s7 }
   0x9   :  { %p62_p3 = scmp.ne.s32.totalorder %s14_s7, %s61_s15  ;;  %p67_p5 = scmp.lt.s32.totalorder %s61_s15, %s61_s15 }
   0xb   :  { %p68_p6 = por %p67_p5, %p66_p4 }
   0xd   :  { %p69_p7 = pnand %p68_p6, %p62_p3 }
   0xf   :  { %72 = shalt.err (!%p69_p7)
}
  0x10   :  { %s100_s16 = smov 128   ;;  %s101_s17 = smov 8  }
  0x11   :  { %19 = dma.hbm_to_vmem [thread:$0]  %s137_s0, 384, %s14_s7, [#allocation3], %s100_s16, %s100_s16, %s101_s17  }
  0x12   :  { %95 = dma.done.wait [#allocation3], 384  }
  0x13   :  { %96 = vsyncadd [#allocation3], 4294966912  ;;  %v23_v0 = vld [vmem:[#allocation2] ss:$2 sm:$0xff]  ;;  %v25_v1 = vld [vmem:[#allocation2 + $0x1] ss:$2 sm:$0xff] }
  0x14   :  { %v28_v2 = vld [vmem:[#allocation2 + $0x2] ss:$2 sm:$0xff]  ;;  %v26_v3 = vadd.f32 %v25_v1, %v23_v0  ;;  %s102_s20 = smov [#allocation5]  }
  0x15   :  { %s38_s21 = sshll.u32 %s102_s20, 4  ;;  %s39_s21 = int_to_ptr.vmem [resolvable:$true] %s38_s21 }
  0x16   :  { %v29_v4 = vadd.f32 %v28_v2, %v26_v3  ;;  %s73_s22 = scalar_lea.vmem %s39_s21, 128  ;;  %p78_p9 = scmp.lt.s32.totalorder %s39_s21, %s39_s21 }
  0x17   :  { %p74_p8 = scmp.ne.s32.totalorder %s39_s21, %s73_s22  ;;  %p79_p10 = scmp.lt.s32.totalorder %s73_s22, %s73_s22 }
  0x18   :  { %v30_v5 = vmul.f32 0.33333334, %v29_v4 }
  0x19   :  { %p80_p11 = por %p79_p10, %p78_p9 }
  0x1a   :  { %31 = vst [vmem:[#allocation5] sm:$0xff] %v30_v5 }
  0x1b   :  { %p81_p12 = pnand %p80_p11, %p74_p8 }
  0x1d   :  { %84 = shalt.err (!%p81_p12)
}
  0x1e   :  { %s85_s24 = scalar_lea.hbm %s138_s1, 128 }
  0x1f   :  { %p86_p13 = scmp.ne.s32.totalorder %s138_s1, %s85_s24  ;;  %p89_p0 = scmp.lt.u32.totalorder %s85_s24, %s138_s1 }
  0x21   :  { %p91_p1 = pnand %p89_p0, %p86_p13 }
  0x23   :  { %94 = shalt.err (!%p91_p1)
}
  0x24   :  { %41 = dma.vmem_to_hbm [thread:$0]  %s39_s21, 128, %s138_s1, [#allocation4]  }
  0x25   :  { %97 = dma.done.wait [#allocation4], 128  }
  0x26   :  { %98 = vsyncadd [#allocation4], 4294967168 }
  0x27   :  { %45 = vsyncpa [#allocation3], 1 }
  0x28   :  { %46 = vsyncpa [#allocation4], 1 }

</bundles_post_ra>
